<compile_context>
chip_gen: v6e
topology: v6e:2x2x1
jax: 0.10.0
libtpu: 0.0.40
codegen_flags: <defaults>
</compile_context>

<pallas_src>
import functools
import numpy as np
import jax
import jax.numpy as jnp
from jax import lax
from jax.experimental import pallas as pl
from jax.experimental.pallas import tpu as pltpu

_HIGH = jax.lax.Precision.HIGHEST
_F32 = jnp.float32


def _round_up(x, m):
    return ((x + m - 1) // m) * m


def _local_grouper_kernel(feat_ref, xyzt_ref, alpha_ref, beta_ref,
                          newxyz_ref, out_ref,
                          fpad_ref, sel_ref, grouped_ref, aslab_ref,
                          *, D, single_tile):
    """Per-batch: FPS -> kNN -> one-hot MXU gather -> center-normalize -> write.

    feat_ref   : (1, N, Cg)          compact fused [points | xyz]
    xyzt_ref   : (1, 3, N)           coordinate-major xyz planes (lane-dense FPS)
    alpha_ref  : (1, Cg_pad)         affine alpha, zero-padded
    beta_ref   : (1, Cg_pad)         affine beta, zero-padded
    newxyz_ref : (1, S, 3)           OUT: FPS-sampled coordinates
    out_ref    : (1, K, S, Wout)     OUT: grouped output (K-major; wrapper fixes layout)
    fpad_ref   : (N, Cg_pad)         VMEM: lane-padded feature table
    sel_ref    : (S, Cg_pad)         VMEM: FPS-selected full feature rows
    grouped_ref: (K, S, Cg_pad)      VMEM: gathered neighbor features
    aslab_ref  : (S, Cg_pad|D_pad)   VMEM: anchor features placed at their output lanes
    """
    N = fpad_ref.shape[0]
    Cg_pad = fpad_ref.shape[1]
    S = sel_ref.shape[0]
    K = grouped_ref.shape[0]
    Cg = D + 3

    # ---- pad the compact feature table into a lane-dense VMEM table (once) ----
    fpad_ref[...] = jnp.zeros_like(fpad_ref)
    fpad_ref[:, 0:Cg] = feat_ref[0]

    xt = xyzt_ref[0]                                         # (3, N) coord planes
    iota_1n = lax.broadcasted_iota(jnp.int32, (1, N), 1)
    iota_3n = lax.broadcasted_iota(jnp.int32, (3, N), 1)
    iota_sn = lax.broadcasted_iota(jnp.int32, (S, N), 1)

    # ---- furthest point sampling (deterministic, start at index 0) ------------
    def fps_body(i, carry):
        dists, far = carry                                   # (1, N), scalar int32
        sel_ref[pl.ds(i, 1), :] = fpad_ref[pl.ds(far, 1), :]      # record selection
        # centroid coords: one masked lane-reduce on the (3, N) planes
        cvals = jnp.max(jnp.where(iota_3n == far, xt, -jnp.inf),
                        axis=1, keepdims=True)               # (3, 1)
        diff = xt - cvals                                    # lane-dense (3, N)
        d = jnp.sum(diff * diff, axis=0, keepdims=True)      # (1, N)
        dists = jnp.minimum(dists, d)
        m = jnp.max(dists)
        far = jnp.min(jnp.where(dists == m, iota_1n, N)).astype(jnp.int32)
        return dists, far

    dists0 = jnp.full((1, N), jnp.inf, _F32)
    lax.fori_loop(0, S, fps_body, (dists0, jnp.array(0, jnp.int32)))

    sel_rows = sel_ref[...]                                  # (S, Cg_pad)
    newxyz_ref[0, :, :] = sel_rows[:, D:D + 3]               # (S, 3) sampled coords

    # ---- kNN seed distances: direct squared differences on the VPU (no MXU) ---
    dist0 = jnp.zeros((S, N), _F32)
    for c in range(3):
        dc = sel_rows[:, D + c:D + c + 1] - xt[c:c + 1, :]   # (S,1)-(1,N) -> (S,N)
        dist0 = dist0 + dc * dc

    featv = fpad_ref[...]                                    # (N, Cg_pad)

    # ---- kNN selection + one-hot MXU gather + streamed sufficient statistics --
    # TODO(synk): a packed value+index reduce (single XLU pass) could replace the
    #             two-reduce argmin if Mosaic lowering / tie semantics are verified.
    def knn_body(k, carry):
        dist, s1, s2 = carry
        mn = jnp.min(dist, axis=-1, keepdims=True)                       # (S, 1)
        idx = jnp.min(jnp.where(dist == mn, iota_sn, N), axis=-1, keepdims=True)
        eq = iota_sn == idx                                              # reused mask
        g = jnp.dot(eq.astype(_F32), featv, precision=_HIGH,
                    preferred_element_type=_F32)                         # (S, Cg_pad)
        grouped_ref[k] = g
        return jnp.where(eq, jnp.inf, dist), s1 + g, s2 + g * g

    zeros_sc = jnp.zeros((S, Cg_pad), _F32)
    _, s1, s2 = lax.fori_loop(0, K, knn_body, (dist0, zeros_sc, zeros_sc))

    # ---- normalize == 'center' from streamed sums (pads contribute zero) -------
    mean = s1 * (1.0 / K)                                    # (S, Cg_pad)
    n = K * S * Cg
    ss = jnp.sum(s2 - mean * s1)                             # sum((x - mean)^2)
    inv = 1.0 / (jnp.sqrt(ss / (n - 1)) + 1e-5)              # 1 / (std_ddof1 + eps)
    scale = inv * alpha_ref[...]                             # (1, Cg_pad)
    anchor = sel_ref[:, 0:D]                                 # (S, D) un-normalized anchors

    if single_tile:
        # anchor lives at lanes [Cg, Cg+D) of the same 128-lane tile -> one dense
        # unmasked 128-wide store per k, no overlapping masked stores.
        aslab_ref[...] = jnp.zeros_like(aslab_ref)
        aslab_ref[:, Cg:Cg + D] = anchor
        shift = beta_ref[...] + aslab_ref[...]               # (S, Cg_pad); beta pads are 0

        def write_body(k, carry):
            out_ref[0, pl.ds(k, 1), :, :] = (
                (grouped_ref[k] - mean) * scale + shift)[None]
            return carry

        lax.fori_loop(0, K, write_body, 0)
    else:
        # anchor gets its own 128-aligned lane slab [Cg_pad, Cg_pad+D_pad):
        # two dense stores per k to disjoint lane tiles.
        D_pad = out_ref.shape[3] - Cg_pad
        aslab_ref[...] = jnp.zeros_like(aslab_ref)           # (S, D_pad)
        aslab_ref[:, 0:D] = anchor
        anchor_pad = aslab_ref[...]
        beta_row = beta_ref[...]

        def write_body(k, carry):
            out_ref[0, pl.ds(k, 1), :, 0:Cg_pad] = (
                (grouped_ref[k] - mean) * scale + beta_row)[None]
            out_ref[0, pl.ds(k, 1), :, Cg_pad:Cg_pad + D_pad] = anchor_pad[None]
            return carry

        lax.fori_loop(0, K, write_body, 0)


@functools.partial(jax.jit, static_argnums=(4, 5))
def local_grouper(xyz, points, affine_alpha, affine_beta, sample_ratio, kneighbors):
    """use_xyz=True, normalize='center' path of LocalGrouper."""
    B, N, _ = xyz.shape
    D = points.shape[-1]
    S = N // sample_ratio
    K = kneighbors
    Cg = D + 3
    Cout = 2 * D + 3
    Cg_pad = _round_up(Cg, 128)
    single_tile = (Cg + D) <= Cg_pad
    if single_tile:
        Wout = Cg_pad
        aslab_w = Cg_pad
    else:
        D_pad = _round_up(D, 128)
        Wout = Cg_pad + D_pad
        aslab_w = D_pad

    # Wrapper-side layout plumbing: compact fused table + coordinate-major planes.
    feat = jnp.concatenate([points.astype(_F32), xyz.astype(_F32)], axis=-1)  # (B,N,Cg)
    xyz_t = jnp.transpose(xyz.astype(_F32), (0, 2, 1))                        # (B,3,N)
    alpha = jnp.zeros((1, Cg_pad), _F32).at[0, :Cg].set(affine_alpha.reshape(-1).astype(_F32))
    beta = jnp.zeros((1, Cg_pad), _F32).at[0, :Cg].set(affine_beta.reshape(-1).astype(_F32))

    kernel = functools.partial(_local_grouper_kernel, D=D, single_tile=single_tile)
    new_xyz, out_p = pl.pallas_call(
        kernel,
        grid=(B,),
        in_specs=[
            pl.BlockSpec((1, N, Cg), lambda b: (b, 0, 0)),
            pl.BlockSpec((1, 3, N), lambda b: (b, 0, 0)),
            pl.BlockSpec((1, Cg_pad), lambda b: (0, 0)),
            pl.BlockSpec((1, Cg_pad), lambda b: (0, 0)),
        ],
        out_specs=(
            pl.BlockSpec((1, S, 3), lambda b: (b, 0, 0)),
            pl.BlockSpec((1, K, S, Wout), lambda b: (b, 0, 0, 0)),
        ),
        out_shape=(
            jax.ShapeDtypeStruct((B, S, 3), _F32),
            jax.ShapeDtypeStruct((B, K, S, Wout), _F32),
        ),
        scratch_shapes=[
            pltpu.VMEM((N, Cg_pad), _F32),
            pltpu.VMEM((S, Cg_pad), _F32),
            pltpu.VMEM((K, S, Cg_pad), _F32),
            pltpu.VMEM((S, aslab_w), _F32),
        ],
        compiler_params=pltpu.CompilerParams(
            dimension_semantics=("parallel",),          # batch axis -> both TCs on v7x
            vmem_limit_bytes=48 * 1024 * 1024,
        ),
    )(feat, xyz_t, alpha, beta)

    # Wrapper-side layout plumbing back to the module's shapes (K-major -> S-major).
    out_kmaj = jnp.transpose(out_p, (0, 2, 1, 3))       # (B, S, K, Wout)
    if single_tile:
        new_points = out_kmaj[..., :Cout]
    else:
        new_points = jnp.concatenate(
            [out_kmaj[..., :Cg], out_kmaj[..., Cg_pad:Cg_pad + D]], axis=-1)
    return new_xyz, new_points


# ---------------- pure-numpy reference (same FPS/kNN semantics) ----------------
def ref_forward(xyz, pts, alpha, beta, S, K):
    xyz = np.asarray(xyz, np.float32)
    pts = np.asarray(pts, np.float32)
    B, N, _ = xyz.shape
    D = pts.shape[-1]
    new_xyz = np.zeros((B, S, 3), np.float32)
    anchor = np.zeros((B, S, D), np.float32)
    grouped_xyz = np.zeros((B, S, K, 3), np.float32)
    grouped_pts = np.zeros((B, S, K, D), np.float32)
    for b in range(B):
        dists = np.full(N, 1e10, np.float32)
        far = 0
        fps = []
        for _ in range(S):
            fps.append(far)
            d = np.sum((xyz[b] - xyz[b, far]) ** 2, -1)
            dists = np.minimum(dists, d)
            far = int(np.argmax(dists))
        fps = np.array(fps)
        new_xyz[b] = xyz[b, fps]
        anchor[b] = pts[b, fps]
        diff = new_xyz[b][:, None, :] - xyz[b][None, :, :]
        sq = np.sum(diff * diff, -1)
        knn = np.argsort(sq, axis=-1, kind="stable")[:, :K]
        grouped_xyz[b] = xyz[b][knn]
        grouped_pts[b] = pts[b][knn]
    grouped = np.concatenate([grouped_pts, grouped_xyz], -1)
    mean = grouped.mean(axis=2, keepdims=True)
    centered = grouped - mean
    std = centered.reshape(B, -1).std(axis=-1, ddof=1)[:, None, None, None]
    normed = centered / (std + 1e-5)
    normed = alpha.reshape(1, 1, 1, -1) * normed + beta.reshape(1, 1, 1, -1)
    out = np.concatenate([normed, np.repeat(anchor[:, :, None, :], K, axis=2)], -1)
    return new_xyz, out


if __name__ == "__main__":
    key = jax.random.PRNGKey(0)
    B, N, D = 2, 32, 8          # channel = 8
    sample_ratio, K = 4, 4      # S = 8 groups, 4 neighbors
    S = N // sample_ratio

    k1, k2 = jax.random.split(key)
    xyz = jax.random.normal(k1, (B, N, 3), dtype=jnp.float32)
    points = jax.random.normal(k2, (B, N, D), dtype=jnp.float32)

    # deterministic parameter init (matches nn.Parameter ones / zeros in __init__)
    affine_alpha = jnp.ones((1, 1, 1, D + 3), jnp.float32)
    affine_beta = jnp.zeros((1, 1, 1, D + 3), jnp.float32)

    new_xyz, new_points = jax.block_until_ready(
        local_grouper(xyz, points, affine_alpha, affine_beta, sample_ratio, K))

    ref_xyz, ref_pts = ref_forward(np.asarray(xyz), np.asarray(points),
                                   np.asarray(affine_alpha), np.asarray(affine_beta), S, K)
    assert new_xyz.shape == (B, S, 3) and new_points.shape == (B, S, K, 2 * D + 3)
    assert np.allclose(np.asarray(new_xyz), ref_xyz, atol=1e-3, rtol=1e-3)
    assert np.allclose(np.asarray(new_points), ref_pts, atol=1e-3, rtol=1e-3)
    print("KERNEL_OK")
</pallas_src>

<mosaic_0001>
module attributes {stable_mosaic.version = 11 : i64} {
  func.func @_local_grouper_kernel(%arg0: i32, %arg1: memref<1x32x11xf32, #tpu.memory_space<vmem>>, %arg2: memref<1x3x32xf32, #tpu.memory_space<vmem>>, %arg3: memref<1x128xf32, #tpu.memory_space<vmem>>, %arg4: memref<1x128xf32, #tpu.memory_space<vmem>>, %arg5: memref<1x8x3xf32, #tpu.memory_space<vmem>>, %arg6: memref<1x4x8x128xf32, #tpu.memory_space<vmem>>, %arg7: memref<32x128xf32, #tpu.memory_space<vmem>>, %arg8: memref<8x128xf32, #tpu.memory_space<vmem>>, %arg9: memref<4x8x128xf32, #tpu.memory_space<vmem>>, %arg10: memref<8x128xf32, #tpu.memory_space<vmem>>) attributes {dimension_semantics = [#tpu.dimension_semantics<parallel>], iteration_bounds = array<i64: 2>, scalar_prefetch = 0 : i64, scratch_operands = 4 : i64, tpu.core_type = #tpu.core_type<tc>, window_params = [{transform_indices = @transform_0, window_bounds = array<i64: 1, 32, 11>}, {transform_indices = @transform_1, window_bounds = array<i64: 1, 3, 32>}, {pipeline_mode = #tpu.pipeline_mode<synchronous>, transform_indices = @transform_2, window_bounds = array<i64: 1, 128>}, {pipeline_mode = #tpu.pipeline_mode<synchronous>, transform_indices = @transform_3, window_bounds = array<i64: 1, 128>}, {transform_indices = @transform_4, window_bounds = array<i64: 1, 8, 3>}, {transform_indices = @transform_5, window_bounds = array<i64: 1, 4, 8, 128>}]} {
    %cst = arith.constant 0.000000e+00 : f32
    %0 = vector.broadcast %cst : f32 to vector<32x128xf32>
    %c0 = arith.constant 0 : index
    %c0_0 = arith.constant 0 : index
    %1 = vector.load %arg7[%c0, %c0_0] : memref<32x128xf32, #tpu.memory_space<vmem>>, vector<32x128xf32>
    tpu.vector_store %arg7[%c0, %c0_0], %0 {strides = array<i32>} : memref<32x128xf32, #tpu.memory_space<vmem>>, vector<32x128xf32>,
    %c0_1 = arith.constant 0 : index
    %c0_2 = arith.constant 0 : index
    %c0_3 = arith.constant 0 : index
    %2 = vector.load %arg1[%c0_1, %c0_2, %c0_3] : memref<1x32x11xf32, #tpu.memory_space<vmem>>, vector<1x32x11xf32>
    %3 = vector.shape_cast %2 : vector<1x32x11xf32> to vector<32x11xf32>
    %c0_4 = arith.constant 0 : index
    %c0_5 = arith.constant 0 : index
    %4 = vector.load %arg7[%c0_4, %c0_5] : memref<32x128xf32, #tpu.memory_space<vmem>>, vector<32x11xf32>
    tpu.vector_store %arg7[%c0_4, %c0_5], %3 {strides = array<i32>} : memref<32x128xf32, #tpu.memory_space<vmem>>, vector<32x11xf32>,
    %c0_6 = arith.constant 0 : index
    %c0_7 = arith.constant 0 : index
    %c0_8 = arith.constant 0 : index
    %5 = vector.load %arg2[%c0_6, %c0_7, %c0_8] : memref<1x3x32xf32, #tpu.memory_space<vmem>>, vector<1x3x32xf32>
    %6 = vector.shape_cast %5 : vector<1x3x32xf32> to vector<3x32xf32>
    %7 = tpu.iota {dimensions = array<i32: 1>} : vector<1x32xi32>
    %8 = tpu.iota {dimensions = array<i32: 1>} : vector<3x32xi32>
    %9 = tpu.iota {dimensions = array<i32: 1>} : vector<8x32xi32>
    %cst_9 = arith.constant 0x7F800000 : f32
    %10 = vector.broadcast %cst_9 : f32 to vector<1x32xf32>
    %c0_i32 = arith.constant 0 : i32
    %c0_i32_10 = arith.constant 0 : i32
    %c8_i32 = arith.constant 8 : i32
    %11 = arith.addi %c0_i32_10, %c8_i32 : i32
    %c1_i32 = arith.constant 1 : i32
    %12:2 = scf.for %arg11 = %c0_i32_10 to %11 step %c1_i32 iter_args(%arg12 = %10, %arg13 = %c0_i32) -> (vector<1x32xf32>, i32)  : i32 {
      %68 = arith.index_cast %arg13 : i32 to index
      %c0_45 = arith.constant 0 : index
      %69 = vector.load %arg7[%68, %c0_45] : memref<32x128xf32, #tpu.memory_space<vmem>>, vector<1x128xf32>
      %70 = arith.index_cast %arg11 : i32 to index
      %c0_46 = arith.constant 0 : index
      %71 = vector.load %arg8[%70, %c0_46] : memref<8x128xf32, #tpu.memory_space<vmem>>, vector<1x128xf32>
      tpu.vector_store %arg8[%70, %c0_46], %69 {strides = array<i32>} : memref<8x128xf32, #tpu.memory_space<vmem>>, vector<1x128xf32>,
      %72 = vector.broadcast %arg13 : i32 to vector<3x32xi32>
      %73 = arith.cmpi eq, %8, %72 : vector<3x32xi32>
      %cst_47 = arith.constant 0xFF800000 : f32
      %74 = vector.broadcast %cst_47 : f32 to vector<3x32xf32>
      %75 = arith.select %73, %6, %74 : vector<3x32xi1>, vector<3x32xf32>
      %cst_48 = arith.constant dense<0xFF800000> : vector<3xf32>
      %76 = vector.multi_reduction <maximumf>, %75, %cst_48 [1] : vector<3x32xf32> to vector<3xf32>
      %77 = vector.shape_cast %76 : vector<3xf32> to vector<3x1xf32>
      %78 = vector.broadcast %77 : vector<3x1xf32> to vector<3x32xf32>
      %79 = arith.subf %6, %78 : vector<3x32xf32>
      %80 = arith.mulf %79, %79 : vector<3x32xf32>
      %cst_49 = arith.constant dense<0.000000e+00> : vector<32xf32>
      %81 = vector.multi_reduction <add>, %80, %cst_49 [0] : vector<3x32xf32> to vector<32xf32>
      %82 = vector.shape_cast %81 : vector<32xf32> to vector<1x32xf32>
      %83 = arith.minimumf %arg12, %82 : vector<1x32xf32>
      %84 = vector.shape_cast %83 : vector<1x32xf32> to vector<1x1x32xf32>
      %cst_50 = arith.constant dense<0xFF800000> : vector<1xf32>
      %85 = vector.multi_reduction <maximumf>, %84, %cst_50 [1, 2] : vector<1x1x32xf32> to vector<1xf32>
      %86 = vector.shape_cast %85 : vector<1xf32> to vector<1x1x1xf32>
      %87 = vector.extract %86[0, 0, 0] : f32 from vector<1x1x1xf32>
      %88 = vector.broadcast %87 : f32 to vector<1x32xf32>
      %89 = arith.cmpf oeq, %83, %88 : vector<1x32xf32>
      %c32_i32 = arith.constant 32 : i32
      %90 = vector.broadcast %c32_i32 : i32 to vector<1x32xi32>
      %91 = arith.select %89, %7, %90 : vector<1x32xi1>, vector<1x32xi32>
      %92 = vector.shape_cast %91 : vector<1x32xi32> to vector<1x1x32xi32>
      %cst_51 = arith.constant dense<2147483647> : vector<1xi32>
      %93 = vector.multi_reduction <minsi>, %92, %cst_51 [1, 2] : vector<1x1x32xi32> to vector<1xi32>
      %94 = vector.shape_cast %93 : vector<1xi32> to vector<1x1x1xi32>
      %95 = vector.extract %94[0, 0, 0] : i32 from vector<1x1x1xi32>
      scf.yield %83, %95 : vector<1x32xf32>, i32
    }
    %c8_i32_11 = arith.constant 8 : i32
    %c0_12 = arith.constant 0 : index
    %c0_13 = arith.constant 0 : index
    %13 = vector.load %arg8[%c0_12, %c0_13] : memref<8x128xf32, #tpu.memory_space<vmem>>, vector<8x128xf32>
    %14 = vector.extract_strided_slice %13 {offsets = [0, 8], sizes = [8, 3], strides = [1, 1]} : vector<8x128xf32> to vector<8x3xf32>
    %c0_14 = arith.constant 0 : index
    %c0_15 = arith.constant 0 : index
    %c0_16 = arith.constant 0 : index
    %15 = vector.load %arg5[%c0_14, %c0_15, %c0_16] : memref<1x8x3xf32, #tpu.memory_space<vmem>>, vector<1x8x3xf32>
    %16 = vector.shape_cast %15 : vector<1x8x3xf32> to vector<8x3xf32>
    %17 = vector.shape_cast %14 : vector<8x3xf32> to vector<1x8x3xf32>
    tpu.vector_store %arg5[%c0_14, %c0_15, %c0_16], %17 {strides = array<i32>} : memref<1x8x3xf32, #tpu.memory_space<vmem>>, vector<1x8x3xf32>,
    %cst_17 = arith.constant 0.000000e+00 : f32
    %18 = vector.broadcast %cst_17 : f32 to vector<8x32xf32>
    %19 = vector.extract_strided_slice %13 {offsets = [0, 8], sizes = [8, 1], strides = [1, 1]} : vector<8x128xf32> to vector<8x1xf32>
    %20 = vector.extract_strided_slice %6 {offsets = [0, 0], sizes = [1, 32], strides = [1, 1]} : vector<3x32xf32> to vector<1x32xf32>
    %21 = vector.broadcast %19 : vector<8x1xf32> to vector<8x32xf32>
    %22 = vector.broadcast %20 : vector<1x32xf32> to vector<8x32xf32>
    %23 = arith.subf %21, %22 : vector<8x32xf32>
    %24 = arith.mulf %23, %23 : vector<8x32xf32>
    %25 = arith.addf %18, %24 : vector<8x32xf32>
    %26 = vector.extract_strided_slice %13 {offsets = [0, 9], sizes = [8, 1], strides = [1, 1]} : vector<8x128xf32> to vector<8x1xf32>
    %27 = vector.extract_strided_slice %6 {offsets = [1, 0], sizes = [1, 32], strides = [1, 1]} : vector<3x32xf32> to vector<1x32xf32>
    %28 = vector.broadcast %26 : vector<8x1xf32> to vector<8x32xf32>
    %29 = vector.broadcast %27 : vector<1x32xf32> to vector<8x32xf32>
    %30 = arith.subf %28, %29 : vector<8x32xf32>
    %31 = arith.mulf %30, %30 : vector<8x32xf32>
    %32 = arith.addf %25, %31 : vector<8x32xf32>
    %33 = vector.extract_strided_slice %13 {offsets = [0, 10], sizes = [8, 1], strides = [1, 1]} : vector<8x128xf32> to vector<8x1xf32>
    %34 = vector.extract_strided_slice %6 {offsets = [2, 0], sizes = [1, 32], strides = [1, 1]} : vector<3x32xf32> to vector<1x32xf32>
    %35 = vector.broadcast %33 : vector<8x1xf32> to vector<8x32xf32>
    %36 = vector.broadcast %34 : vector<1x32xf32> to vector<8x32xf32>
    %37 = arith.subf %35, %36 : vector<8x32xf32>
    %38 = arith.mulf %37, %37 : vector<8x32xf32>
    %39 = arith.addf %32, %38 : vector<8x32xf32>
    %c0_18 = arith.constant 0 : index
    %c0_19 = arith.constant 0 : index
    %40 = vector.load %arg7[%c0_18, %c0_19] : memref<32x128xf32, #tpu.memory_space<vmem>>, vector<32x128xf32>
    %cst_20 = arith.constant 0.000000e+00 : f32
    %41 = vector.broadcast %cst_20 : f32 to vector<8x128xf32>
    %c0_i32_21 = arith.constant 0 : i32
    %c4_i32 = arith.constant 4 : i32
    %42 = arith.addi %c0_i32_21, %c4_i32 : i32
    %c1_i32_22 = arith.constant 1 : i32
    %43:3 = scf.for %arg11 = %c0_i32_21 to %42 step %c1_i32_22 iter_args(%arg12 = %39, %arg13 = %41, %arg14 = %41) -> (vector<8x32xf32>, vector<8x128xf32>, vector<8x128xf32>)  : i32 {
      %cst_45 = arith.constant dense<0x7F800000> : vector<8xf32>
      %68 = vector.multi_reduction <minimumf>, %arg12, %cst_45 [1] : vector<8x32xf32> to vector<8xf32>
      %69 = vector.shape_cast %68 : vector<8xf32> to vector<8x1xf32>
      %70 = vector.broadcast %69 : vector<8x1xf32> to vector<8x32xf32>
      %71 = arith.cmpf oeq, %arg12, %70 : vector<8x32xf32>
      %c32_i32 = arith.constant 32 : i32
      %72 = vector.broadcast %c32_i32 : i32 to vector<8x32xi32>
      %73 = arith.select %71, %9, %72 : vector<8x32xi1>, vector<8x32xi32>
      %cst_46 = arith.constant dense<2147483647> : vector<8xi32>
      %74 = vector.multi_reduction <minsi>, %73, %cst_46 [1] : vector<8x32xi32> to vector<8xi32>
      %75 = vector.shape_cast %74 : vector<8xi32> to vector<8x1xi32>
      %76 = vector.broadcast %75 : vector<8x1xi32> to vector<8x32xi32>
      %77 = arith.cmpi eq, %9, %76 : vector<8x32xi32>
      %78 = arith.extui %77 : vector<8x32xi1> to vector<8x32xi32>
      %79 = arith.sitofp %78 : vector<8x32xi32> to vector<8x32xf32>
      %cst_47 = arith.constant dense<0.000000e+00> : vector<8x128xf32>
      %80 = tpu.matmul %79, %40, %cst_47 {dimension_numbers = #tpu.dot_dimension_numbers<[1], [0], [0], [1], [0, 0, 1, 1], [], []>, precision = #tpu.contract_precision<fp32>} : vector<8x32xf32>, vector<32x128xf32>, vector<8x128xf32> -> vector<8x128xf32>
      %81 = arith.index_cast %arg11 : i32 to index
      %c0_48 = arith.constant 0 : index
      %c0_49 = arith.constant 0 : index
      %82 = vector.load %arg9[%81, %c0_48, %c0_49] : memref<4x8x128xf32, #tpu.memory_space<vmem>>, vector<1x8x128xf32>
      %83 = vector.shape_cast %82 : vector<1x8x128xf32> to vector<8x128xf32>
      %84 = vector.shape_cast %80 : vector<8x128xf32> to vector<1x8x128xf32>
      tpu.vector_store %arg9[%81, %c0_48, %c0_49], %84 {strides = array<i32>} : memref<4x8x128xf32, #tpu.memory_space<vmem>>, vector<1x8x128xf32>,
      %cst_50 = arith.constant 0x7F800000 : f32
      %85 = vector.broadcast %cst_50 : f32 to vector<8x32xf32>
      %86 = arith.select %77, %85, %arg12 : vector<8x32xi1>, vector<8x32xf32>
      %87 = arith.addf %arg13, %80 : vector<8x128xf32>
      %88 = arith.mulf %80, %80 : vector<8x128xf32>
      %89 = arith.addf %arg14, %88 : vector<8x128xf32>
      scf.yield %86, %87, %89 : vector<8x32xf32>, vector<8x128xf32>, vector<8x128xf32>
    }
    %c4_i32_23 = arith.constant 4 : i32
    %cst_24 = arith.constant 2.500000e-01 : f32
    %44 = vector.broadcast %cst_24 : f32 to vector<8x128xf32>
    %45 = arith.mulf %43#1, %44 : vector<8x128xf32>
    %46 = arith.mulf %45, %43#1 : vector<8x128xf32>
    %47 = arith.subf %43#2, %46 : vector<8x128xf32>
    %48 = vector.shape_cast %47 : vector<8x128xf32> to vector<1x8x128xf32>
    %cst_25 = arith.constant dense<0.000000e+00> : vector<1xf32>
    %49 = vector.multi_reduction <add>, %48, %cst_25 [1, 2] : vector<1x8x128xf32> to vector<1xf32>
    %50 = vector.shape_cast %49 : vector<1xf32> to vector<1x1x1xf32>
    %51 = vector.extract %50[0, 0, 0] : f32 from vector<1x1x1xf32>
    %cst_26 = arith.constant 3.510000e+02 : f32
    %52 = arith.divf %51, %cst_26 : f32
    %53 = math.sqrt %52 : f32
    %cst_27 = arith.constant 9.99999974E-6 : f32
    %54 = arith.addf %53, %cst_27 : f32
    %cst_28 = arith.constant 1.000000e+00 : f32
    %55 = arith.divf %cst_28, %54 : f32
    %c0_29 = arith.constant 0 : index
    %c0_30 = arith.constant 0 : index
    %56 = vector.load %arg3[%c0_29, %c0_30] : memref<1x128xf32, #tpu.memory_space<vmem>>, vector<1x128xf32>
    %57 = vector.broadcast %55 : f32 to vector<1x128xf32>
    %58 = arith.mulf %57, %56 : vector<1x128xf32>
    %c0_31 = arith.constant 0 : index
    %c0_32 = arith.constant 0 : index
    %59 = vector.load %arg8[%c0_31, %c0_32] : memref<8x128xf32, #tpu.memory_space<vmem>>, vector<8x8xf32>
    %cst_33 = arith.constant 0.000000e+00 : f32
    %60 = vector.broadcast %cst_33 : f32 to vector<8x128xf32>
    %c0_34 = arith.constant 0 : index
    %c0_35 = arith.constant 0 : index
    %61 = vector.load %arg10[%c0_34, %c0_35] : memref<8x128xf32, #tpu.memory_space<vmem>>, vector<8x128xf32>
    tpu.vector_store %arg10[%c0_34, %c0_35], %60 {strides = array<i32>} : memref<8x128xf32, #tpu.memory_space<vmem>>, vector<8x128xf32>,
    %c0_36 = arith.constant 0 : index
    %c11 = arith.constant 11 : index
    %62 = vector.load %arg10[%c0_36, %c11] : memref<8x128xf32, #tpu.memory_space<vmem>>, vector<8x8xf32>
    tpu.vector_store %arg10[%c0_36, %c11], %59 {strides = array<i32>} : memref<8x128xf32, #tpu.memory_space<vmem>>, vector<8x8xf32>,
    %c0_37 = arith.constant 0 : index
    %c0_38 = arith.constant 0 : index
    %63 = vector.load %arg4[%c0_37, %c0_38] : memref<1x128xf32, #tpu.memory_space<vmem>>, vector<1x128xf32>
    %c0_39 = arith.constant 0 : index
    %c0_40 = arith.constant 0 : index
    %64 = vector.load %arg10[%c0_39, %c0_40] : memref<8x128xf32, #tpu.memory_space<vmem>>, vector<8x128xf32>
    %65 = vector.broadcast %63 : vector<1x128xf32> to vector<8x128xf32>
    %66 = arith.addf %65, %64 : vector<8x128xf32>
    %c0_i32_41 = arith.constant 0 : i32
    %c4_i32_42 = arith.constant 4 : i32
    %67 = arith.addi %c0_i32_41, %c4_i32_42 : i32
    %c1_i32_43 = arith.constant 1 : i32
    scf.for %arg11 = %c0_i32_41 to %67 step %c1_i32_43  : i32 {
      %68 = arith.index_cast %arg11 : i32 to index
      %c0_45 = arith.constant 0 : index
      %c0_46 = arith.constant 0 : index
      %69 = vector.load %arg9[%68, %c0_45, %c0_46] : memref<4x8x128xf32, #tpu.memory_space<vmem>>, vector<1x8x128xf32>
      %70 = vector.shape_cast %69 : vector<1x8x128xf32> to vector<8x128xf32>
      %71 = arith.subf %70, %45 : vector<8x128xf32>
      %72 = vector.broadcast %58 : vector<1x128xf32> to vector<8x128xf32>
      %73 = arith.mulf %71, %72 : vector<8x128xf32>
      %74 = arith.addf %73, %66 : vector<8x128xf32>
      %75 = vector.shape_cast %74 : vector<8x128xf32> to vector<1x8x128xf32>
      %c0_47 = arith.constant 0 : index
      %76 = arith.index_cast %arg11 : i32 to index
      %c0_48 = arith.constant 0 : index
      %c0_49 = arith.constant 0 : index
      %77 = vector.load %arg6[%c0_47, %76, %c0_48, %c0_49] : memref<1x4x8x128xf32, #tpu.memory_space<vmem>>, vector<1x1x8x128xf32>
      %78 = vector.shape_cast %77 : vector<1x1x8x128xf32> to vector<1x8x128xf32>
      %79 = vector.shape_cast %75 : vector<1x8x128xf32> to vector<1x1x8x128xf32>
      tpu.vector_store %arg6[%c0_47, %76, %c0_48, %c0_49], %79 {strides = array<i32>} : memref<1x4x8x128xf32, #tpu.memory_space<vmem>>, vector<1x1x8x128xf32>,
    }
    %c4_i32_44 = arith.constant 4 : i32
    return
  }
  func.func @transform_0(%arg0: i32) -> (i32, i32, i32) {
    %c0_i32 = arith.constant 0 : i32
    %c0_i32_0 = arith.constant 0 : i32
    %c0_i32_1 = arith.constant 0 : i32
    return %arg0, %c0_i32, %c0_i32_0 : i32, i32, i32
  }
  func.func @transform_1(%arg0: i32) -> (i32, i32, i32) {
    %c0_i32 = arith.constant 0 : i32
    %c0_i32_0 = arith.constant 0 : i32
    %c0_i32_1 = arith.constant 0 : i32
    return %arg0, %c0_i32, %c0_i32_0 : i32, i32, i32
  }
  func.func @transform_2(%arg0: i32) -> (i32, i32) {
    %c0_i32 = arith.constant 0 : i32
    %c0_i32_0 = arith.constant 0 : i32
    %c0_i32_1 = arith.constant 0 : i32
    return %c0_i32, %c0_i32_0 : i32, i32
  }
  func.func @transform_3(%arg0: i32) -> (i32, i32) {
    %c0_i32 = arith.constant 0 : i32
    %c0_i32_0 = arith.constant 0 : i32
    %c0_i32_1 = arith.constant 0 : i32
    return %c0_i32, %c0_i32_0 : i32, i32
  }
  func.func @transform_4(%arg0: i32) -> (i32, i32, i32) {
    %c0_i32 = arith.constant 0 : i32
    %c0_i32_0 = arith.constant 0 : i32
    %c0_i32_1 = arith.constant 0 : i32
    return %arg0, %c0_i32, %c0_i32_0 : i32, i32, i32
  }
  func.func @transform_5(%arg0: i32) -> (i32, i32, i32, i32) {
    %c0_i32 = arith.constant 0 : i32
    %c0_i32_0 = arith.constant 0 : i32
    %c0_i32_1 = arith.constant 0 : i32
    %c0_i32_2 = arith.constant 0 : i32
    return %arg0, %c0_i32, %c0_i32_0, %c0_i32_1 : i32, i32, i32, i32
  }
}

</mosaic_0001>

<bundles_post_ra>
// kernel: local_grouper.1
= control target key start
LH: loop header
LB: loop body
LE: loop exit
PB: predicated region body
PF: predicated region fallthrough
CT: control target
= control target key end

     0   :  { %s1424_s18 = smov 0   ;;  %s1643_s0 = inlined_call_operand.vmem [shape: f32[2,32,11], index: 0, kind: input, shape index: {}]   ;;  %s1644_s1 = inlined_call_operand.vmem [shape: f32[2,3,32], index: 1, kind: input, shape index: {}]   ;;  %s1645_s2 = inlined_call_operand.vmem [shape: f32[1,128], index: 2, kind: input, shape index: {}]   ;;  %s1646_s3 = inlined_call_operand.vmem [shape: f32[1,128], index: 3, kind: input, shape index: {}]   ;;  %s1647_s4 = inlined_call_operand.vmem [shape: f32[2,8,3], index: 4, kind: output, shape index: {0}]   ;;  %s1648_s5 = inlined_call_operand.vmem [shape: f32[2,4,8,128], index: 5, kind: output, shape index: {1}]  }
   0x1 LB: > { %s1098_s19 = sadd.s32 4294967295, %s1352_s18   ;;  %p1102_p0 = scmp.ge.s32.totalorder %s1352_s18, 1  ;;  %s1352_s18 = sphi %s1424_s18, %s16_s18  }
   0x2   : > { %p199_p1 = scmp.lt.s32.totalorder %s1352_s18, 3 }
   0x4   : > { %p200_p2 = pnand %p1102_p0, %p199_p1 }
   0x5   : > { %p235_p3 = scmp.lt.s32.totalorder (!%p200_p2), %s1098_s19, 1  ;;  %s1457_s10 = smov (!%p200_p2), 0  }
   0x6   : > { %203 = sbr.rel (%p200_p2) target bundleno = 1718 (0x6b6), region = 36  ;;  %s1459_s11 = smov (!%p200_p2), 0  }
   0xb   : > { %v267_v0 = vlaneseq  ;;  %v1386_v1 = vmov 0.0   ;;  %s1652_s19 = smov (!%p235_p3, %s1098_s19), 1  ;;  %vm261_vm0 = vcmask 89088   ;;  %v1358_v8 = vmov inf  }
   0xc   : > { %253 = vst [vmem:[#allocation2] sm:$0xff] %v1386_v1  ;;  %254 = vst [vmem:[#allocation2 + $0x8] sm:$0xff] %v1386_v1  ;;  %s1118_s20 = sshll.u32 %s1652_s19, 5  ;;  %s1105_s21 = sshll.u32 %s1652_s19, 2 }
   0xd   : > { %255 = vst [vmem:[#allocation2 + $0x10] sm:$0xff] %v1386_v1  ;;  %256 = vst [vmem:[#allocation2 + $0x18] sm:$0xff] %v1386_v1  ;;  %v1437_v2 = vand.u32 127, %v267_v0  ;;  %s239_s24 = scalar_lea.vmem %s1643_s0, %s1118_s20  ;;  %s243_s27 = scalar_lea.vmem %s1644_s1, %s1105_s21 }
   0xe   : > { %s1106_s28 = sshll.u32 %s1652_s19, 3  ;;  %s1448_s6 = scalar_lea.vmem %s1648_s5, %s1118_s20  ;;  %v257_v3 = vld [vmem:[%s239_s24] sm:$0xff]  ;;  %v258_v5 = vld [vmem:[%s239_s24 + $0x8] sm:$0xff]  ;;  %v259_v6 = vld [vmem:[%s239_s24 + $0x10] sm:$0xff] }
   0xf   : > { %v1450_v4 = vld [vmem:[%s243_s27] sm:$0x7]  ;;  %s1455_s9 = scalar_lea.vmem %s1647_s4, %s1106_s28  ;;  %262 = vst.msk [vmem:[#allocation2] sm:$0xff] %vm261_vm0, %v257_v3  ;;  %263 = vst.msk [vmem:[#allocation2 + $0x8] sm:$0xff] %vm261_vm0, %v258_v5  ;;  %v260_v7 = vld [vmem:[%s239_s24 + $0x18] sm:$0xff] }
  0x10   : > { %264 = vst.msk [vmem:[#allocation2 + $0x10] sm:$0xff] %vm261_vm0, %v259_v6  ;;  %265 = vst.msk [vmem:[#allocation2 + $0x18] sm:$0xff] %vm261_vm0, %v260_v7 }
  0x11 LB: >> { %v281_v9 = vstv %s1356_s10  ;;  %vm284_vm1 = vcmask 256000   ;;  %s277_s12 = scalar_lea.vmem [#allocation2], %s1356_s10  ;;  %s279_s13 = scalar_lea.vmem [#allocation3], %s1364_s11  ;;  %vm298_vm3 = vcmask 261120   ;;  %s1364_s11 = sphi %s1459_s11, %s274_s11   ;;  %v1360_v8 = vphi %v1358_v8, %v297_v8   ;;  %s1356_s10 = sphi %s1457_s10, %s1219_s10  }
  0x12   : >> { %vm282_vm2 = vcmp.eq.s32.totalorder %v1437_v2, %v281_v9  ;;  %s274_s11 = sadd.s32 1, %s1364_s11  }
  0x13   : >> { %v283_v11 = vsel %vm282_vm2, %v1450_v4, -inf  ;;  %p271_p4 = scmp.ge.s32.totalorder %s274_s11, 8  }
  0x14   : >> { %v285_v12 = vsel %vm284_vm1, %v283_v11, -inf  ;;  %v1387_v40 = vmov (%p271_p4), 8   ;;  %v1388_v41 = vmov (%p271_p4), 10   ;;  %v1389_v42 = vmov (%p271_p4), 9   ;;  %s1390_s15 = smov (%p271_p4), 120   ;;  %s1503_s16 = smov (%p271_p4), 0  }
  0x15   : >> { %286 = vmax.xlane.f32.xlu0 %v285_v12  ;;  %1308 = vset.pattern.permute.xlu1 (%p271_p4), %v1388_v41  ;;  %v1486_v47 = vshrl.u32 (%p271_p4), %v267_v0, 7  ;;  %vm327_vm6 = vcmask (%p271_p4), 23552   ;;  %v1497_v5 = vmov (%p271_p4), 0.0   ;;  %v1499_v6 = vmov (%p271_p4), 0.0  }
  0x16   : > { %1306 = vset.pattern.permute.xlu0 (%p271_p4), %v1387_v40  ;;  %v1477_v43 = vld [vmem:[#allocation2] sm:$0xff] (%p271_p4)  ;;  %v1479_v44 = vld [vmem:[#allocation2 + $0x8] sm:$0xff] (%p271_p4) }
  0x17   : >> { %v278_v10 = vld [vmem:[%s277_s12] sm:$0x1]  ;;  %v1481_v45 = vld [vmem:[#allocation2 + $0x10] sm:$0xff] (%p271_p4)  ;;  %v1483_v46 = vld [vmem:[#allocation2 + $0x18] sm:$0xff] (%p271_p4)  ;;  %v335_v48 = vsub.s32 (%p271_p4), 0, %v1486_v47  ;;  %v357_v49 = vsub.s32 (%p271_p4), 2, %v1486_v47 }
  0x18   : >> { %280 = vst [vmem:[%s279_s13] sm:$0x1] %v278_v10  ;;  %v346_v50 = vsub.s32 (%p271_p4), 1, %v1486_v47 }
  0x19   : > { %v336_v51 = vrot.slane (%p271_p4), %v1450_v4, %v335_v48  ;;  %v358_v53 = vrot.slane (%p271_p4), %v1450_v4, %v357_v49 }
  0x1a   : > { %v347_v55 = vrot.slane (%p271_p4), %v1450_v4, %v346_v50 }
  0x1f   : > { %v322_v39 = vld [vmem:[#allocation3] sm:$0xff] (%p271_p4) }
  0x9e   : >> { %v287_v13 = vpop.xlane.xlu0 %286 }
  0x9f   : >> { %v288_v14 = vsub.f32 %v1450_v4, %v287_v13 }
  0xa1   : >> { %v289_v15 = vmul.f32 %v288_v14, %v288_v14 }
  0xa3   : >> { %v290_v16 = vsel %vm284_vm1, %v289_v15, 0.0 }
  0xa4   : >> { %v291_v17 = vrot.slane %v290_v16, 4 }
  0xa6   : >> { %v292_v18 = vadd.f32 %v291_v17, %v290_v16 }
  0xa8   : >> { %v293_v19 = vrot.slane %v292_v18, 2 }
  0xaa   : >> { %v294_v20 = vadd.f32 %v293_v19, %v292_v18 }
  0xac   : >> { %v295_v21 = vrot.slane %v294_v20, 1 }
  0xae   : >> { %v296_v22 = vadd.f32 %v295_v21, %v294_v20 }
  0xb0   : >> { %v297_v8 = vmin.f32 %v1360_v8, %v296_v22  }
  0xb2   : >> { %v299_v23 = vsel %vm298_vm3, %v297_v8, -inf }
  0xb3   : >> { %300 = vmax.xlane.f32.xlu0 %v299_v23 }
  0xc9   : > { %330 = vperm.xlu0 (%p271_p4), %1306, %v322_v39  }
  0xcd   : > { %1307 = vset.pattern.permute.xlu0 (%p271_p4), %v1389_v42 }
  0xce   : > { %341 = vperm.xlu0 (%p271_p4), %1307, %v322_v39  }
  0xd2   : > { %1309 = vset.pattern.permute.xlu0 (%p271_p4), %v1388_v41 }
 0x13c   : >> { %v301_v24 = vpop.xlane.xlu0 %300 }
 0x13d   : >> { %1216 = vpush %v301_v24 }
 0x144   : > { %v331_v52 = vpop.permute.xlu0 (%p271_p4), %330 }
 0x145   : > { %v337_v56 = vsub.f32 (%p271_p4), %v331_v52, %v336_v51 }
 0x147   : > { %v338_v61 = vmul.f32 (%p271_p4), %v337_v56, %v337_v56 }
 0x149   : > { %v342_v59 = vpop.permute.xlu0 (%p271_p4), %341 }
 0x14a   : > { %v348_v60 = vsub.f32 (%p271_p4), %v342_v59, %v347_v55 }
 0x14c   : > { %v349_v62 = vmul.f32 (%p271_p4), %v348_v60, %v348_v60 }
 0x14e   : > { %v350_v0 = vadd.f32 (%p271_p4), %v349_v62, %v338_v61 }
 0x16e   : >> { %s1217_s14 = spop %1216 }
 0x16f   : >> { %v303_v25 = vstv %s1217_s14 }
 0x170   : >> { %vm304_vm4 = vcmp.eq.f32.partialorder %v297_v8, %v303_v25 }
 0x171   : >> { %v305_v26 = vsel %vm304_vm4, %v1437_v2, 32 }
 0x172   : >> { %v306_v27 = vsel %vm298_vm3, %v305_v26, 2147483647 }
 0x173   : >> { %v308_v28 = vshra.s32 %v306_v27, 16  ;;  %v307_v30 = vand.u32 65535, %v306_v27 }
 0x175   : >> { %v310_v29 = vcvt.s32.f32 %v308_v28  ;;  %v309_v32 = vcvt.s32.f32 %v307_v30 }
 0x177   : >> { %311 = vmin.xlane.f32.xlu1 %v310_v29 }
 0x200   : >> { %v312_v31 = vpop.xlane.xlu1 %311 }
 0x201   : >> { %vm313_vm5 = vcmp.eq.f32.partialorder %v310_v29, %v312_v31  ;;  %v318_v34 = vcvt.f32.s32 %v312_v31 }
 0x202   : >> { %v314_v33 = vsel %vm313_vm5, %v309_v32, inf }
 0x203   : >> { %315 = vmin.xlane.f32.xlu1 %v314_v33  ;;  %v319_v36 = vshll.u32 %v318_v34, 16 }
 0x214   : > { %352 = vperm.xlu1 (%p271_p4), %1308, %v322_v39  }
 0x218   : > { %324 = vrot.lane.b32.xlu1 (%p271_p4), %v322_v39, %s1390_s15 }
 0x28c   : >> { %v316_v35 = vpop.xlane.xlu1 %315 }
 0x28d   : >> { %v317_v37 = vcvt.f32.s32 %v316_v35 }
 0x28f   : >> { %v320_v38 = vadd.s32 %v319_v36, %v317_v37 }
 0x290   : > { %v353_v54 = vpop.permute.xlu1 (%p271_p4), %352 }
 0x291   : >> { %1218 = vpush %v320_v38  ;;  %v359_v57 = vsub.f32 (%p271_p4), %v353_v54, %v358_v53 }
 0x293   : > { %v360_v63 = vmul.f32 (%p271_p4), %v359_v57, %v359_v57 }
 0x294   : > { %v325_v58 = vpop.permute.xlu1 (%p271_p4), %324 }
 0x295   : > { %328 = vst.msk [vmem:[%s1455_s9] sm:$0xff] (%p271_p4), %vm327_vm6, %v325_v58  ;;  %v361_v3 = vadd.f32 (%p271_p4), %v360_v63, %v350_v0  }
 0x2be   : > { %273 = sbr.rel (!%p271_p4) target bundleno = 17 (0x11), region = 107 }
 0x2c2   : >> { %s1219_s10 = spop %1218  }
 0x2c3 LB: >> { %v376_v4 = vsel %vm298_vm3, %v1376_v3, inf  ;;  %v1523_v12 = vand.u32 4294901760, %v1483_v46  ;;  %v1391_v13 = vmov 0.0   ;;  %v430_v22 = vand.u32 4294901760, %v1481_v45  ;;  %s1113_s17 = sshll.u32 %s1380_s16, 3  ;;  %s371_s16 = sadd.s32 1, %s1380_s16   ;;  %s1380_s16 = sphi %s1503_s16, %s371_s16   ;;  %v1376_v3 = vphi %v361_v3, %v1575_v3   ;;  %v1372_v6 = vphi %v1499_v6, %v1650_v6   ;;  %v1368_v5 = vphi %v1497_v5, %v1649_v5  }
 0x2c4   : >> { %377 = vmin.xlane.f32.xlu0 %v376_v4  ;;  %1161 = vmatprep.subr.mxu1 %v1391_v13  ;;  %v433_v24 = vand.u32 4294901760, %v1479_v44  ;;  %v436_v27 = vand.u32 4294901760, %v1477_v43  ;;  %vm1392_vm9 = vmmov 0   ;;  %s888_s19 = scalar_lea.vmem [#allocation4], %s1113_s17  ;;  %p368_p5 = scmp.ge.s32.totalorder %s371_s16, 4  }
 0x2c5   : >> { %1150 = vmatprep.subr.mxu0 %v1391_v13  ;;  %v1529_v14 = vsub.f32 %v1483_v46, %v1523_v12  ;;  %v1540_v23 = vsub.f32 %v1481_v45, %v430_v22  ;;  %1169 = vmatprep.mubr.msk.f32.mxu1 %vm1392_vm9, %v1391_v13  ;;  %926 = vst [vmem:[#allocation5] sm:$0xff] (%p368_p5), %v1386_v1  ;;  %s1393_s20 = smov (%p368_p5), 11   ;;  %vm931_vm11 = vcmask (%p368_p5), 154712   ;;  %v1114_v1 = vld [vmem:[%s1646_s3] ss:$0 sm:$0xff] (%p368_p5)  ;;  %s1382_s30 = smov (%p368_p5), 0  }
 0x2c6   : >> { %1151 = vmatpush3.msra.mxu0 %v1523_v12  ;;  %v1546_v26 = vsub.f32 %v1479_v44, %v433_v24  ;;  %v1555_v30 = vsub.f32 %v1477_v43, %v436_v27  ;;  %1158 = vmatprep.mubr.msk.f32.mxu0 %vm1392_vm9, %v1391_v13 }
 0x2c7   : >> { %1152 = vmatprep.subr.mxu0 %v1391_v13  ;;  %v508_v15 = vand.u32 4294901760, %v1529_v14  ;;  %v515_v25 = vand.u32 4294901760, %v1540_v23 }
 0x2c8   : >> { %1153 = vmatpush3.msra.mxu0 %v430_v22  ;;  %v522_v29 = vand.u32 4294901760, %v1546_v26  ;;  %v529_v33 = vand.u32 4294901760, %v1555_v30 }
 0x2c9   : >> { %v509_v16 = vsub.f32 %v1529_v14, %v508_v15  ;;  %1154 = vmatprep.subr.mxu0 %v1391_v13  ;;  %v516_v28 = vsub.f32 %v1540_v23, %v515_v25 }
 0x2ca   : >> { %1155 = vmatpush3.msra.mxu0 %v433_v24  ;;  %v523_v32 = vsub.f32 %v1546_v26, %v522_v29  ;;  %v530_v35 = vsub.f32 %v1555_v30, %v529_v33 }
 0x2cb   : >> { %v510_v17 = vand.u32 4294901760, %v509_v16  ;;  %1156 = vmatprep.subr.mxu0 %v1391_v13  ;;  %v517_v31 = vand.u32 4294901760, %v516_v28 }
 0x2cc   : >> { %1157 = vmatpush3.msra.mxu0 %v436_v27  ;;  %v524_v34 = vand.u32 4294901760, %v523_v32  ;;  %v531_v36 = vand.u32 4294901760, %v530_v35 }
 0x2cd   : >> { %1162 = vmatpush3.msra.mxu1 %v510_v17  ;;  %1172 = vmatprep.subr.mxu0 %v1391_v13 }
 0x2ce   : >> { %1163 = vmatprep.subr.mxu1 %v1391_v13 }
 0x2cf   : >> { %1164 = vmatpush3.msra.mxu1 %v517_v31 }
 0x2d0   : >> { %1165 = vmatprep.subr.mxu1 %v1391_v13 }
 0x2d1   : >> { %1166 = vmatpush3.msra.mxu1 %v524_v34 }
 0x2d2   : >> { %1167 = vmatprep.subr.mxu1 %v1391_v13 }
 0x2d3   : >> { %1168 = vmatpush3.msra.mxu1 %v531_v36 }
 0x2d4   : >> { %1183 = vmatprep.subr.mxu1 %v1391_v13 }
 0x34d   : >> { %v378_v7 = vpop.xlane.xlu0 %377 }
 0x34e   : >> { %vm379_vm7 = vcmp.eq.f32.partialorder %v1376_v3, %v378_v7 }
 0x34f   : >> { %v380_v8 = vsel %vm379_vm7, %v1437_v2, 32 }
 0x350   : >> { %v381_v9 = vsel %vm298_vm3, %v380_v8, 2147483647 }
 0x351   : >> { %v383_v10 = vshra.s32 %v381_v9, 16  ;;  %v382_v18 = vand.u32 65535, %v381_v9 }
 0x353   : >> { %v385_v11 = vcvt.s32.f32 %v383_v10  ;;  %v384_v20 = vcvt.s32.f32 %v382_v18  ;;  %v925_v18 = vld [vmem:[#allocation3] sm:$0xff] (%p368_p5) }
 0x355   : >> { %386 = vmin.xlane.f32.xlu0 %v385_v11 }
 0x3de   : >> { %v387_v19 = vpop.xlane.xlu0 %386 }
 0x3df   : >> { %vm388_vm8 = vcmp.eq.f32.partialorder %v385_v11, %v387_v19  ;;  %v393_v37 = vcvt.f32.s32 %v387_v19 }
 0x3e0   : >> { %v389_v21 = vsel %vm388_vm8, %v384_v20, inf }
 0x3e1   : >> { %390 = vmin.xlane.f32.xlu1 %v389_v21  ;;  %v394_v39 = vshll.u32 %v393_v37, 16 }
 0x46a   : >> { %v391_v38 = vpop.xlane.xlu1 %390 }
 0x46b   : >> { %v392_v40 = vcvt.f32.s32 %v391_v38 }
 0x46d   : >> { %v395_v41 = vadd.s32 %v394_v39, %v392_v40 }
 0x46f   : >> { %vm396_vm10 = vcmp.eq.s32.totalorder %v1437_v2, %v395_v41 }
 0x470   : >> { %v1109_v42 = vsel %vm396_vm10, 1.0, %v1391_v13  ;;  %v1575_v3 = vsel %vm396_vm10, inf, %v1376_v3  }
 0x471   : >> { %v400_v49 = vsel %vm298_vm3, %v1109_v42, 0  ;;  %1170 = vmatmul.mubr.msk.f32.vlgmr.msra.gmra.mxu1 %vm298_vm3, %v1109_v42 }
 0x472   : >> { %v472_v50 = vsub.f32 %v400_v49, %v400_v49  ;;  %1184 = vmatpush3.msra.mxu1 %v1523_v12  ;;  %1191 = vmatprep.mubr.msk.f32.mxu1 %vm1392_vm9, %v1391_v13 }
 0x473   : >> { %1185 = vmatprep.subr.mxu1 %v1391_v13 }
 0x474   : >> { %1186 = vmatpush3.msra.mxu1 %v430_v22  ;;  %v473_v51 = vand.u32 4294901760, %v472_v50 }
 0x475   : >> { %1187 = vmatprep.subr.mxu1 %v1391_v13 }
 0x476   : >> { %1188 = vmatpush3.msra.mxu1 %v433_v24  ;;  %v474_v52 = vsub.f32 %v472_v50, %v473_v51 }
 0x477   : >> { %1189 = vmatprep.subr.mxu1 %v1391_v13 }
 0x478   : >> { %1190 = vmatpush3.msra.mxu1 %v436_v27  ;;  %v475_v53 = vand.u32 4294901760, %v474_v52 }
 0x479   : >> { %1192 = vmatmul.mubr.f32.vlgmr.msra.gmra.mxu1 %v473_v51  ;;  %1205 = vmatprep.subr.mxu1 %v1391_v13 }
 0x47a   : >> { %1206 = vmatpush3.msra.mxu1 %v1523_v12  ;;  %1159 = vmatmul.mubr.f32.vlgmr.msra.gmra.mxu0 %v475_v53 }
 0x47b   : >> { %1173 = vmatpush3.msra.mxu0 %v1529_v14  ;;  %1207 = vmatprep.subr.mxu1 %v1391_v13 }
 0x47c   : >> { %1174 = vmatprep.subr.mxu0 %v1391_v13  ;;  %1208 = vmatpush3.msra.mxu1 %v430_v22 }
 0x47d   : >> { %1175 = vmatpush3.msra.mxu0 %v1540_v23  ;;  %1209 = vmatprep.subr.mxu1 %v1391_v13 }
 0x47e   : >> { %1176 = vmatprep.subr.mxu0 %v1391_v13  ;;  %1210 = vmatpush3.msra.mxu1 %v433_v24 }
 0x47f   : >> { %1177 = vmatpush3.msra.mxu0 %v1546_v26  ;;  %1211 = vmatprep.subr.mxu1 %v1391_v13 }
 0x480   : >> { %1178 = vmatprep.subr.mxu0 %v1391_v13  ;;  %1212 = vmatpush3.msra.mxu1 %v436_v27 }
 0x481   : >> { %1213 = vmatprep.mubr.msk.f32.mxu1 %vm1392_vm9, %v1391_v13  ;;  %1179 = vmatpush3.msra.mxu0 %v1555_v30 }
 0x482   : >> { %1180 = vmatprep.mubr.msk.f32.mxu0 %vm1392_vm9, %v1391_v13  ;;  %1214 = vmatmul.mubr.msk.f32.vlgmr.msra.gmra.mxu1 %vm298_vm3, %v1109_v42 }
 0x483   : >> { %1181 = vmatmul.mubr.f32.vlgmr.msra.gmra.mxu0 %v472_v50  ;;  %1194 = vmatprep.subr.mxu0 %v1391_v13 }
 0x484   : >> { %1195 = vmatpush3.msra.mxu0 %v508_v15  ;;  %1202 = vmatprep.mubr.msk.f32.mxu0 %vm1392_vm9, %v1391_v13 }
 0x485   : >> { %1196 = vmatprep.subr.mxu0 %v1391_v13 }
 0x486   : >> { %1197 = vmatpush3.msra.mxu0 %v515_v25 }
 0x487   : >> { %1198 = vmatprep.subr.mxu0 %v1391_v13 }
 0x488   : >> { %1199 = vmatpush3.msra.mxu0 %v522_v29  ;;  %v922_v29 = vld [vmem:[%s1645_s2] sm:$0x1] (%p368_p5) }
 0x489   : >> { %1200 = vmatprep.subr.mxu0 %v1391_v13 }
 0x48a   : >> { %1201 = vmatpush3.msra.mxu0 %v529_v33 }
 0x48b   : >> { %1203 = vmatmul.mubr.msk.f32.vlgmr.msra.gmra.mxu0 %vm298_vm3, %v1109_v42 }
 0x531   : >> { %v568_v54 = vpop.f32.mrf.mxu1 }
 0x533   : >> { %v1171_v55 = vpop.f32.mrf.mxu1 }
 0x539   : >> { %v725_v56 = vpop.f32.mrf.mxu1 }
 0x53a   : >> { %v477_v57 = vpop.f32.mrf.mxu0 }
 0x53b   : >> { %v1193_v58 = vpop.f32.mrf.mxu1  ;;  %v569_v62 = vadd.f32 %v568_v54, %v477_v57 }
 0x53c   : >> { %v1160_v59 = vpop.f32.mrf.mxu0 }
 0x542   : >> { %v883_v60 = vpop.f32.mrf.mxu1 }
 0x543   : >> { %v648_v61 = vpop.f32.mrf.mxu0 }
 0x544   : >> { %v1215_v63 = vpop.f32.mrf.mxu1  ;;  %v649_v4 = vadd.f32 %v648_v61, %v569_v62 }
 0x545   : >> { %v1182_v0 = vpop.f32.mrf.mxu0 }
 0x546   : >> { %v726_v7 = vadd.f32 %v725_v56, %v649_v4 }
 0x54b   : >> { %v808_v8 = vpop.f32.mrf.mxu0 }
 0x54c   : >> { %v809_v9 = vadd.f32 %v808_v8, %v726_v7 }
 0x54d   : >> { %v1204_v10 = vpop.f32.mrf.mxu0 }
 0x54e   : >> { %v884_v11 = vadd.f32 %v883_v60, %v809_v9 }
 0x550   : >> { %889 = vst [vmem:[%s888_s19] sm:$0xff] %v884_v11  ;;  %v891_v12 = vadd.f32 %v1372_v6, %v884_v11   ;;  %v892_v13 = vmul.f32 %v884_v11, %v884_v11  ;;  %370 = sbr.rel (!%p368_p5) target bundleno = 707 (0x2c3), region = 118 }
 0x552   : >> { %v893_v14 = vadd.f32 %v1368_v5, %v892_v13   ;;  %v1650_v6 = vmov %v891_v12  ;;  %v894_v15 = vmul.f32 (%p368_p5), 0.25, %v891_v12 }
 0x554   : >> { %v1649_v5 = vmov %v893_v14  ;;  %v895_v16 = vmul.f32 (%p368_p5), %v894_v15, %v891_v12 }
 0x556   : > { %v896_v17 = vsub.f32 %v893_v14, %v895_v16 }
 0x558   : > { %897 = vadd.xlane.f32.xlu0 %v896_v17 }
 0x56e   : > { %928 = vrot.lane.b32.xlu0 %v925_v18, %s1393_s20 }
 0x5e1   : > { %v898_v19 = vpop.xlane.xlu0 %897 }
 0x5e2   : > { %v899_v20 = vrot.slane %v898_v19, 4 }
 0x5e4   : > { %v900_v21 = vadd.f32 %v899_v20, %v898_v19 }
 0x5e5   : > { %v929_v3 = vpop.permute.xlu0 %928 }
 0x5e6   : > { %v901_v22 = vrot.slane %v900_v21, 2  ;;  %932 = vst.msk [vmem:[#allocation5] sm:$0xff] %vm931_vm11, %v929_v3 }
 0x5e8   : > { %v902_v23 = vadd.f32 %v901_v22, %v900_v21 }
 0x5ea   : > { %v903_v24 = vrot.slane %v902_v23, 1 }
 0x5ec   : > { %v904_v25 = vadd.f32 %v903_v24, %v902_v23 }
 0x5ed   : > { %v934_v2 = vld [vmem:[#allocation5] sm:$0xff] }
 0x5ee   : > { %1220 = vpush %v904_v25  ;;  %v941_v43 = vadd.f32 %v1114_v1, %v934_v2 }
 0x61f   : > { %s1221_s23 = spop %1220 }
 0x620   : > { %s908_s24 = smul.f32 0.0028490028, %s1221_s23 }
 0x622   : > { %v909_v44 = vstv %s908_s24 }
 0x623   : > { %1310 = vrsqrt.f32 %v909_v44  ;;  %vm912_vm12 = vcmp.eq.f32.partialorder %v909_v44, inf  ;;  %v915_v5 = vand.u32 2147483648, %v909_v44  ;;  %vm914_vm13 = vcmp.eq.f32.partialorder %v909_v44, 0.0 }
 0x630   : > { %v1311_v45 = vpop.eup %1310 }
 0x631   : > { %v911_v46 = vmul.f32 %v1311_v45, %v909_v44 }
 0x633   : > { %v913_v6 = vsel %vm912_vm12, %v909_v44, %v911_v46 }
 0x634   : > { %v916_v26 = vsel %vm914_vm13, %v915_v5, %v913_v6 }
 0x635   : > { %1222 = vpush %v916_v26 }
 0x666   : > { %s1223_s25 = spop %1222 }
 0x667   : > { %s918_s26 = sadd.f32 1e-05, %s1223_s25 }
 0x669   : > { %v919_v27 = vstv %s918_s26 }
 0x66a   : > { %1312 = vrcp.f32 %v919_v27 }
 0x677   : > { %v1313_v28 = vpop.eup %1312 }
 0x678   : > { %1224 = vpush %v1313_v28 }
 0x6a9   : > { %s1225_s29 = spop %1224 }
 0x6aa   : > { %v923_v30 = vstv %s1225_s29 }
 0x6ab   : > { %v924_v31 = vmul.f32 %v923_v30, %v922_v29 }
 0x6ac LB: >> { %s1115_s7 = sshll.u32 %s1384_s30, 3  ;;  %s947_s30 = sadd.s32 1, %s1384_s30   ;;  %s1384_s30 = sphi %s1382_s30, %s947_s30  }
 0x6ad   : >> { %v956_v32 = vrot.slane %v924_v31, %v335_v48  ;;  %s949_s8 = scalar_lea.vmem [#allocation4], %s1115_s7  ;;  %s960_s9 = scalar_lea.vmem %s1448_s6, %s1115_s7 }
 0x6ae   : >> { %v950_v33 = vld [vmem:[%s949_s8] sm:$0xff]  ;;  %p944_p6 = scmp.ge.s32.totalorder %s947_s30, 4  }
 0x6af   : >> { %v951_v34 = vsub.f32 %v950_v33, %v894_v15 }
 0x6b1   : >> { %v958_v35 = vmul.f32 %v956_v32, %v951_v34  ;;  %946 = sbr.rel (!%p944_p6) target bundleno = 1708 (0x6ac), region = 129 }
 0x6b3   : >> { %v959_v36 = vadd.f32 %v958_v35, %v941_v43 }
 0x6b5   : >> { %961 = vst [vmem:[%s960_s9] sm:$0xff] %v959_v36 }
 0x6b6 PF: > { %s16_s18 = sadd.s32 1, %s1352_s18  }
 0x6b7   : > { %p13_p7 = scmp.ge.s32.totalorder %s16_s18, 4  }
 0x6b9   :  { %15 = sbr.rel (!%p13_p7) target bundleno = 1 (0x1), region = 140 }

</bundles_post_ra>
